<compile_context>
chip_gen: v7x
topology: tpu7x:2x2x1
jax: 0.10.0
libtpu: 0.0.40
codegen_flags: <defaults>
</compile_context>

<pallas_src>
import functools

import jax
import jax.numpy as jnp
from jax.experimental import pallas as pl
from jax.experimental.pallas import tpu as pltpu


def _leaky(x, alpha):
    return jnp.where(x > 0, x, alpha * x)


def inception_kernel(patches_ref, wpk_ref, bpk_ref, wf_ref, bf_ref, out_ref,
                     *, alpha):
    """One grid step == one image.

    patches_ref : (1, Kp, H*W)    im2col patches, transposed (K-major), bf16
    wpk_ref     : (4*Cb, Kp)      packed branch weights (transposed), bf16
    bpk_ref     : (4*Cb, 1)       packed branch biases, f32
    wf_ref      : (width, 4*Cb)   final 1x1 conv weight (transposed), bf16
    bf_ref      : (width, 1)      final bias, f32
    out_ref     : (1, width, H*W) output, f32 (already channel-major / NCHW)
    """
    patches = patches_ref[0]                                   # (Kp, HW)

    # All four branches in one MXU matmul, f32 accumulation.
    act = jnp.dot(wpk_ref[...], patches,
                  preferred_element_type=jnp.float32)          # (4Cb, HW)
    act = _leaky(act + bpk_ref[...], alpha)                    # fused epilogue

    # Fused final 1x1 conv (matmul) + bias + leaky.
    out = jnp.dot(wf_ref[...], act.astype(wf_ref.dtype),
                  preferred_element_type=jnp.float32)          # (width, HW)
    out = _leaky(out + bf_ref[...], alpha)

    out_ref[0] = out.astype(out_ref.dtype)                     # lane-dense store


_MAX_K = 7
_MAX_PAD = _MAX_K // 2


def _pack_branch_weights(params, cin, cb):
    """Pack w1/w2/w3/w4 (HWIO) into one (49*Cin, 4*Cb) slab on the 7x7 tap grid."""
    wpk = jnp.zeros((_MAX_K, _MAX_K, cin, 4 * cb), jnp.float32)
    for i, (name, k) in enumerate((("w1", 1), ("w2", 3), ("w3", 5), ("w4", 7))):
        o = _MAX_PAD - k // 2
        wpk = wpk.at[o:o + k, o:o + k, :, i * cb:(i + 1) * cb].set(params[name])
    return wpk.reshape(_MAX_K * _MAX_K * cin, 4 * cb)


def inception_forward(x_nchw, params, alpha=0.01, use_bf16=True):
    x = x_nchw.astype(jnp.float32)
    N, Cin, H, W = x.shape
    HW = H * W
    cb = params["w1"].shape[-1]
    width = params["wf"].shape[1]

    # ---- wrapper-side im2col (transposed: K-major rows, pixels along lanes) ----
    xpad = jnp.pad(x, ((0, 0), (0, 0),
                       (_MAX_PAD, _MAX_PAD), (_MAX_PAD, _MAX_PAD)))
    taps = [xpad[:, :, ty:ty + H, tx:tx + W]
            for ty in range(_MAX_K) for tx in range(_MAX_K)]
    patches = jnp.stack(taps, axis=1).reshape(N, _MAX_K * _MAX_K * Cin, HW)

    K = _MAX_K * _MAX_K * Cin
    Kp = pl.cdiv(K, 128) * 128                     # align contraction dim (196->256)
    patches = jnp.pad(patches, ((0, 0), (0, Kp - K), (0, 0)))

    # ---- pack parameters ----
    wpk = _pack_branch_weights(params, Cin, cb)            # (K, 4Cb)
    wpk = jnp.pad(wpk, ((0, Kp - K), (0, 0))).T            # (4Cb, Kp)
    bpk = jnp.concatenate(
        [params["b1"], params["b2"], params["b3"], params["b4"]],
        axis=-1).reshape(4 * cb, 1).astype(jnp.float32)
    wf_t = params["wf"].T                                  # (width, 4Cb)
    bf = params["bf"].reshape(width, 1).astype(jnp.float32)

    cdt = jnp.bfloat16 if use_bf16 else jnp.float32        # MXU operand dtype
    patches = patches.astype(cdt)
    wpk = wpk.astype(cdt)
    wf_t = wf_t.astype(cdt)

    kernel = functools.partial(inception_kernel, alpha=alpha)

    out = pl.pallas_call(
        kernel,
        out_shape=jax.ShapeDtypeStruct((N, width, HW), jnp.float32),
        grid=(N,),
        in_specs=[
            pl.BlockSpec((1, Kp, HW), lambda n: (n, 0, 0)),
            pl.BlockSpec((4 * cb, Kp), lambda n: (0, 0)),
            pl.BlockSpec((4 * cb, 1), lambda n: (0, 0)),
            pl.BlockSpec((width, 4 * cb), lambda n: (0, 0)),
            pl.BlockSpec((width, 1), lambda n: (0, 0)),
        ],
        out_specs=pl.BlockSpec((1, width, HW), lambda n: (n, 0, 0)),
        compiler_params=pltpu.CompilerParams(
            dimension_semantics=("parallel",),   # images independent -> 2 TCs on v7x
            vmem_limit_bytes=32 * 1024 * 1024,
        ),
    )(patches, wpk, bpk, wf_t, bf)

    # Output is already channel-major: a pure reshape gives NCHW (no transpose).
    return out.reshape(N, width, H, W)


def reference_forward(x_nchw, params, alpha=0.01):
    """Plain-JAX reference (lax.conv) for correctness checking."""
    x = jnp.transpose(x_nchw, (0, 2, 3, 1)).astype(jnp.float32)

    def conv(inp, w, b, k):
        p = k // 2
        y = jax.lax.conv_general_dilated(
            inp, w, window_strides=(1, 1), padding=[(p, p), (p, p)],
            dimension_numbers=("NHWC", "HWIO", "NHWC"))
        return _leaky(y + b.reshape(1, 1, 1, -1), alpha)

    c1 = conv(x, params["w1"], params["b1"], 1)
    c2 = conv(x, params["w2"], params["b2"], 3)
    c3 = conv(x, params["w3"], params["b3"], 5)
    c4 = conv(x, params["w4"], params["b4"], 7)
    cat = jnp.concatenate([c1, c2, c3, c4], axis=-1)
    wf = params["wf"].reshape(1, 1, *params["wf"].shape)  # (1,1,4Cb,width) HWIO
    out = jax.lax.conv_general_dilated(
        cat, wf, window_strides=(1, 1), padding=[(0, 0), (0, 0)],
        dimension_numbers=("NHWC", "HWIO", "NHWC"))
    out = _leaky(out + params["bf"].reshape(1, 1, 1, -1), alpha)
    return jnp.transpose(out, (0, 3, 1, 2))


def init_params(key, in_channels, width, ratio=4):
    cb = width // ratio
    keys = jax.random.split(key, 10)
    scale = 0.1

    def w(k, kh):  # HWIO conv weight
        return scale * jax.random.normal(k, (kh, kh, in_channels, cb), jnp.float32)

    params = {
        "w1": w(keys[0], 1), "b1": scale * jax.random.normal(keys[1], (1, cb)),
        "w2": w(keys[2], 3), "b2": scale * jax.random.normal(keys[3], (1, cb)),
        "w3": w(keys[4], 5), "b3": scale * jax.random.normal(keys[5], (1, cb)),
        "w4": w(keys[6], 7), "b4": scale * jax.random.normal(keys[7], (1, cb)),
        "wf": scale * jax.random.normal(keys[8], (4 * cb, width), jnp.float32),
        "bf": scale * jax.random.normal(keys[9], (1, width), jnp.float32),
    }
    return jax.tree_util.tree_map(lambda a: a.astype(jnp.float32), params)


if __name__ == "__main__":
    key = jax.random.PRNGKey(0)
    k_x, k_p = jax.random.split(key)

    N, Cin, H, W = 2, 4, 16, 16
    width, ratio, alpha = 32, 4, 0.01

    x = jax.random.normal(k_x, (N, Cin, H, W), jnp.float32)  # NCHW like PyTorch
    params = init_params(k_p, Cin, width, ratio)

    use_bf16 = True  # MXU operands in bf16, f32 accumulation
    out = inception_forward(x, params, alpha=alpha, use_bf16=use_bf16)
    out = jax.block_until_ready(out)

    ref = reference_forward(x, params, alpha=alpha)
    assert out.shape == (N, width, H, W), out.shape
    tol = 2e-2 if use_bf16 else 1e-4
    assert jnp.allclose(out, ref, atol=tol, rtol=tol), float(
        jnp.max(jnp.abs(out - ref)))

    print("KERNEL_OK")
</pallas_src>

<mosaic_0001>
module attributes {stable_mosaic.version = 11 : i64} {
  func.func @inception_kernel(%arg0: i32, %arg1: memref<1x256x256xbf16, #tpu.memory_space<vmem>>, %arg2: memref<32x256xbf16, #tpu.memory_space<vmem>>, %arg3: memref<32x1xf32, #tpu.memory_space<vmem>>, %arg4: memref<32x32xbf16, #tpu.memory_space<vmem>>, %arg5: memref<32x1xf32, #tpu.memory_space<vmem>>, %arg6: memref<1x32x256xf32, #tpu.memory_space<vmem>>) attributes {dimension_semantics = [#tpu.dimension_semantics<parallel>], iteration_bounds = array<i64: 2>, scalar_prefetch = 0 : i64, scratch_operands = 0 : i64, tpu.core_type = #tpu.core_type<tc>, window_params = [{transform_indices = @transform_0, window_bounds = array<i64: 1, 256, 256>}, {pipeline_mode = #tpu.pipeline_mode<synchronous>, transform_indices = @transform_1, window_bounds = array<i64: 32, 256>}, {pipeline_mode = #tpu.pipeline_mode<synchronous>, transform_indices = @transform_2, window_bounds = array<i64: 32, 1>}, {pipeline_mode = #tpu.pipeline_mode<synchronous>, transform_indices = @transform_3, window_bounds = array<i64: 32, 32>}, {pipeline_mode = #tpu.pipeline_mode<synchronous>, transform_indices = @transform_4, window_bounds = array<i64: 32, 1>}, {transform_indices = @transform_5, window_bounds = array<i64: 1, 32, 256>}]} {
    %c0 = arith.constant 0 : index
    %c0_0 = arith.constant 0 : index
    %c0_1 = arith.constant 0 : index
    %0 = vector.load %arg1[%c0, %c0_0, %c0_1] : memref<1x256x256xbf16, #tpu.memory_space<vmem>>, vector<1x256x256xbf16>
    %1 = vector.shape_cast %0 : vector<1x256x256xbf16> to vector<256x256xbf16>
    %c0_2 = arith.constant 0 : index
    %c0_3 = arith.constant 0 : index
    %2 = vector.load %arg2[%c0_2, %c0_3] : memref<32x256xbf16, #tpu.memory_space<vmem>>, vector<32x256xbf16>
    %cst = arith.constant dense<0.000000e+00> : vector<32x256xf32>
    %3 = tpu.matmul %2, %1, %cst {dimension_numbers = #tpu.dot_dimension_numbers<[1], [0], [0], [1], [0, 0, 1, 1], [], []>} : vector<32x256xbf16>, vector<256x256xbf16>, vector<32x256xf32> -> vector<32x256xf32>
    %c0_4 = arith.constant 0 : index
    %c0_5 = arith.constant 0 : index
    %4 = vector.load %arg3[%c0_4, %c0_5] : memref<32x1xf32, #tpu.memory_space<vmem>>, vector<32x1xf32>
    %5 = vector.broadcast %4 : vector<32x1xf32> to vector<32x256xf32>
    %6 = arith.addf %3, %5 : vector<32x256xf32>
    %cst_6 = arith.constant 0.000000e+00 : f32
    %7 = vector.broadcast %cst_6 : f32 to vector<32x256xf32>
    %8 = arith.cmpf ogt, %6, %7 : vector<32x256xf32>
    %cst_7 = arith.constant 0.00999999977 : f32
    %9 = vector.broadcast %cst_7 : f32 to vector<32x256xf32>
    %10 = arith.mulf %9, %6 : vector<32x256xf32>
    %11 = arith.select %8, %6, %10 : vector<32x256xi1>, vector<32x256xf32>
    %c0_8 = arith.constant 0 : index
    %c0_9 = arith.constant 0 : index
    %12 = vector.load %arg4[%c0_8, %c0_9] : memref<32x32xbf16, #tpu.memory_space<vmem>>, vector<32x32xbf16>
    %13 = arith.truncf %11 : vector<32x256xf32> to vector<32x256xbf16>
    %cst_10 = arith.constant dense<0.000000e+00> : vector<32x256xf32>
    %14 = tpu.matmul %12, %13, %cst_10 {dimension_numbers = #tpu.dot_dimension_numbers<[1], [0], [0], [1], [0, 0, 1, 1], [], []>} : vector<32x32xbf16>, vector<32x256xbf16>, vector<32x256xf32> -> vector<32x256xf32>
    %c0_11 = arith.constant 0 : index
    %c0_12 = arith.constant 0 : index
    %15 = vector.load %arg5[%c0_11, %c0_12] : memref<32x1xf32, #tpu.memory_space<vmem>>, vector<32x1xf32>
    %16 = vector.broadcast %15 : vector<32x1xf32> to vector<32x256xf32>
    %17 = arith.addf %14, %16 : vector<32x256xf32>
    %cst_13 = arith.constant 0.000000e+00 : f32
    %18 = vector.broadcast %cst_13 : f32 to vector<32x256xf32>
    %19 = arith.cmpf ogt, %17, %18 : vector<32x256xf32>
    %cst_14 = arith.constant 0.00999999977 : f32
    %20 = vector.broadcast %cst_14 : f32 to vector<32x256xf32>
    %21 = arith.mulf %20, %17 : vector<32x256xf32>
    %22 = arith.select %19, %17, %21 : vector<32x256xi1>, vector<32x256xf32>
    %c0_15 = arith.constant 0 : index
    %c0_16 = arith.constant 0 : index
    %c0_17 = arith.constant 0 : index
    %23 = vector.load %arg6[%c0_15, %c0_16, %c0_17] : memref<1x32x256xf32, #tpu.memory_space<vmem>>, vector<1x32x256xf32>
    %24 = vector.shape_cast %23 : vector<1x32x256xf32> to vector<32x256xf32>
    %25 = vector.shape_cast %22 : vector<32x256xf32> to vector<1x32x256xf32>
    tpu.vector_store %arg6[%c0_15, %c0_16, %c0_17], %25 {strides = array<i32>} : memref<1x32x256xf32, #tpu.memory_space<vmem>>, vector<1x32x256xf32>,
    return
  }
  func.func @transform_0(%arg0: i32) -> (i32, i32, i32) {
    %c0_i32 = arith.constant 0 : i32
    %c0_i32_0 = arith.constant 0 : i32
    %c0_i32_1 = arith.constant 0 : i32
    return %arg0, %c0_i32, %c0_i32_0 : i32, i32, i32
  }
  func.func @transform_1(%arg0: i32) -> (i32, i32) {
    %c0_i32 = arith.constant 0 : i32
    %c0_i32_0 = arith.constant 0 : i32
    %c0_i32_1 = arith.constant 0 : i32
    return %c0_i32, %c0_i32_0 : i32, i32
  }
  func.func @transform_2(%arg0: i32) -> (i32, i32) {
    %c0_i32 = arith.constant 0 : i32
    %c0_i32_0 = arith.constant 0 : i32
    %c0_i32_1 = arith.constant 0 : i32
    return %c0_i32, %c0_i32_0 : i32, i32
  }
  func.func @transform_3(%arg0: i32) -> (i32, i32) {
    %c0_i32 = arith.constant 0 : i32
    %c0_i32_0 = arith.constant 0 : i32
    %c0_i32_1 = arith.constant 0 : i32
    return %c0_i32, %c0_i32_0 : i32, i32
  }
  func.func @transform_4(%arg0: i32) -> (i32, i32) {
    %c0_i32 = arith.constant 0 : i32
    %c0_i32_0 = arith.constant 0 : i32
    %c0_i32_1 = arith.constant 0 : i32
    return %c0_i32, %c0_i32_0 : i32, i32
  }
  func.func @transform_5(%arg0: i32) -> (i32, i32, i32) {
    %c0_i32 = arith.constant 0 : i32
    %c0_i32_0 = arith.constant 0 : i32
    %c0_i32_1 = arith.constant 0 : i32
    return %arg0, %c0_i32, %c0_i32_0 : i32, i32, i32
  }
}

</mosaic_0001>

<bundles_post_ra>
// kernel: tpu_custom_call.1
= control target key start
LH: loop header
LB: loop body
LE: loop exit
PB: predicated region body
PF: predicated region fallthrough
CT: control target
= control target key end

     0   :  { %10 = vsyncpa [#allocation3], 0  ;;  %s1336_s0 = inlined_call_operand.hbm [shape: bf16[2,256,256], index: 0, kind: input, shape index: {}]   ;;  %s1337_s1 = inlined_call_operand.vmem [shape: bf16[32,256], index: 1, kind: input, shape index: {}]   ;;  %s1338_s2 = inlined_call_operand.vmem [shape: f32[32,1], index: 2, kind: input, shape index: {}]   ;;  %s1339_s3 = inlined_call_operand.vmem [shape: bf16[32,32], index: 3, kind: input, shape index: {}]   ;;  %s1340_s4 = inlined_call_operand.vmem [shape: f32[32,1], index: 4, kind: input, shape index: {}]   ;;  %s1341_s5 = inlined_call_operand.hbm [shape: f32[2,32,256], index: 5, kind: output, shape index: {}]  }
   0x1   :  { %12 = vsyncpa [#allocation3 + $0x1], 0 }
   0x2   :  { %13 = vsyncpa [#allocation4], 0 }
   0x3   :  { %15 = vsyncpa [#allocation4 + $0x1], 0  ;;  %s1082_s18 = smov 0   ;;  %s1084_s19 = smov 0  }
   0x4   :  { %s1086_s20 = smov 0   ;;  %s1088_s21 = smov 0  }
   0x5 LB: > { %s1103_s22 = sadd.s32 4294967295, %s1043_s21   ;;  %s782_s23 = sadd.s32 4294967294, %s1043_s21   ;;  %s1043_s21 = sphi %s1088_s21, %s1354_s21   ;;  %s1039_s20 = sphi %s1086_s20, %s1353_s20   ;;  %s1035_s19 = sphi %s1084_s19, %s1352_s19   ;;  %s1031_s18 = sphi %s1082_s18, %s1351_s18  }
   0x6   : > { %s1107_s24 = sadd.s32 1, %s1043_s21   ;;  %s28_s25 = sadd.s32 1, %s1039_s20 }
   0x7   : > { %s25_s26 = ssub.s32 %s1043_s21, %s1107_s24  ;;  %p35_p0 = scmp.ne.s32.totalorder %s1039_s20, %s1035_s19 }
   0x8   : > { %p26_p1 = scmp.eq.s32.totalorder %s25_s26, 0  ;;  %p36_p2 = scmp.eq.s32.totalorder %s1043_s21, 0 }
   0x9   : > { %p41_p3 = scmp.ne.s32.totalorder %s1035_s19, %s1031_s18  ;;  %p42_p4 = scmp.eq.s32.totalorder %s1103_s22, 0 }
   0xa   : > { %s1119_s27 = scalar_select %p26_p1, %s1039_s20, %s28_s25  }
   0xb   : > { %p1121_p5 = por %p36_p2, %p35_p0  ;;  %p1125_p6 = por %p42_p4, %p41_p3 }
   0xc   : > { %p149_p7 = scmp.eq.s32.totalorder %s1103_s22, 1  ;;  %p155_p8 = scmp.eq.s32.totalorder %s782_s23, 1 }
   0xd   : > { %p850_p10 = scmp.lt.s32.totalorder %s1043_s21, 2  ;;  %s187_s7 = sand.u32 1, %s1039_s20  }
   0xe   : > { %p1132_p11 = por %p149_p7, %p35_p0  ;;  %p1136_p12 = por %p155_p8, %p41_p3 }
   0xf   : > { %s836_s8 = sshll.u32 %s1043_s21, 12  ;;  %s785_s9 = sshll.u32 %s187_s7, 8 }
  0x10   : > { %s1345_s30 = scalar_select %p1132_p11, 1, 0 }
  0x11   : > { %s1346_s6 = scalar_select %p1136_p12, 1, 0 }
  0x12   : > { %s1145_s12 = scalar_lea.hbm %s1336_s0, %s836_s8  ;;  %s191_s13 = scalar_lea.vmem [#allocation2], %s785_s9 }
  0x13   : > { %s198_s14 = sshll.u32 %s191_s13, 4  ;;  %p1149_p13 = pnand %p850_p10, %p1121_p5  ;;  %s1153_s14 = int_to_ptr.vmem [resolvable:$true] %s198_s14 }
  0x14   : > { %s1155_s16 = scalar_lea.sflag [#allocation3], %s187_s7  ;;  %s947_s17 = scalar_lea.hbm %s1145_s12, 4096 }
  0x15   : > { %p948_p0 = scmp.ne.s32.totalorder %s1145_s12, %s947_s17  ;;  %p949_p1 = pneg %p1149_p13 }
  0x16   : > { %s952_s26 = scalar_lea.hbm %s1336_s0, 8192  ;;  %p953_p4 = scmp.lt.u32.totalorder %s1145_s12, %s1336_s0 }
  0x17   : > { %p950_p2 = pnand %p949_p1, %p948_p0  ;;  %p954_p5 = scmp.lt.u32.totalorder %s952_s26, %s947_s17 }
  0x18   : > { %p956_p8 = scmp.lt.u32.totalorder %s947_s17, %s1145_s12 }
  0x19   : > { %p951_p3 = pneg %p950_p2  ;;  %p955_p7 = por %p954_p5, %p953_p4 }
  0x1b   : > { %p957_p10 = por %p956_p8, %p955_p7 }
  0x1d   : > { %p958_p9 = pnand %p957_p10, %p951_p3 }
  0x1f   : > { %961 = shalt.err (!%p958_p9)
}
  0x20   : > { %s962_s7 = scalar_lea.vmem %s1153_s14, 4096  ;;  %s1045_s9 = smov [#allocation2]  }
  0x21   : > { %p963_p0 = scmp.ne.s32.totalorder %s1153_s14, %s962_s7  ;;  %s967_s10 = sshll.u32 %s1045_s9, 4  ;;  %s968_s10 = int_to_ptr.vmem [resolvable:$false] %s967_s10 }
  0x22   : > { %s969_s11 = scalar_lea.vmem %s968_s10, 8192  ;;  %p970_p11 = scmp.lt.s32.totalorder %s1153_s14, %s968_s10 }
  0x23   : > { %p965_p2 = pnand %p963_p0, %p949_p1  ;;  %p971_p4 = scmp.lt.s32.totalorder %s969_s11, %s962_s7 }
  0x25   : > { %p966_p12 = pneg %p965_p2  ;;  %p972_p5 = por %p971_p4, %p970_p11 }
  0x27   : > { %p973_p7 = pnand %p972_p5, %p966_p12 }
  0x29   : > { %976 = shalt.err (!%p973_p7)
}
  0x2a   : > { %s1046_s13 = smov 128   ;;  %s1047_s17 = smov 8  }
  0x2b   : > { %845 = dma.hbm_to_vmem [thread:$0]  (!%p1149_p13), %s1145_s12, 4096, %s1153_s14, %s1155_s16, %s1046_s13, %s1046_s13, %s1047_s17  }
  0x2c   : > { %p788_p9 = scmp.ge.s32.totalorder %s1043_s21, 1  ;;  %p206_p1 = scmp.lt.s32.totalorder %s1043_s21, 3 }
  0x2e   : > { %p207_p3 = pnand %p788_p9, %p206_p1 }
  0x2f   : > { %s1186_s23 = sand.u32 (!%p207_p3), 1, %s1035_s19  }
  0x30   : > { %210 = sbr.rel (%p207_p3) target bundleno = 599 (0x257), region = 40  ;;  %s789_s25 = sshll.u32 (!%p207_p3), %s1186_s23, 8 }
  0x31   : > { %s213_s26 = scalar_lea.sflag (!%p207_p3), [#allocation3], %s1186_s23  ;;  %s1190_s28 = scalar_lea.vmem (!%p207_p3), [#allocation2], %s789_s25 }
  0x37   : > { %1022 = dma.done.wait (%p1125_p6), %s213_s26, 4096  }
  0x38   : > { %1024 = vsyncadd (%p1125_p6), %s213_s26, 4294963200  ;;  %v1048_v0 = vmov 0   ;;  %v891_v1 = vld [vmem:[%s1190_s28 + $0x4] ss:$8 sps:$4 sm:$0xff]   ;;  %v893_v2 = vld [vmem:[%s1190_s28] ss:$8 sps:$4 sm:$0xff]  }
  0x39   : > { %889 = vset.pattern.permute.xlu0 %v1048_v0  ;;  %890 = vset.pattern.permute.xlu1 %v1048_v0  ;;  %v894_v3 = vld [vmem:[%s1190_s28 + $0x14] ss:$8 sps:$4 sm:$0xff]   ;;  %v896_v4 = vld [vmem:[%s1190_s28 + $0x10] ss:$8 sps:$4 sm:$0xff]   ;;  %v897_v5 = vld [vmem:[%s1190_s28 + $0x24] ss:$8 sps:$4 sm:$0xff]  }
  0x3a   : > { %642 = vmatprep.mubr.bf16.mxu1 %v1048_v0  ;;  %484 = vmatprep.subr.bf16.mxu0 %v891_v1  ;;  %v899_v6 = vld [vmem:[%s1190_s28 + $0x20] ss:$8 sps:$4 sm:$0xff]   ;;  %v900_v7 = vld [vmem:[%s1190_s28 + $0x34] ss:$8 sps:$4 sm:$0xff]   ;;  %v902_v8 = vld [vmem:[%s1190_s28 + $0x30] ss:$8 sps:$4 sm:$0xff]  }
  0x3b   : > { %485 = vmatpush1.bf16.msra.mxu0 %v893_v2  ;;  %v903_v9 = vld [vmem:[%s1190_s28 + $0x44] ss:$8 sps:$4 sm:$0xff]   ;;  %v905_v10 = vld [vmem:[%s1190_s28 + $0x40] ss:$8 sps:$4 sm:$0xff]   ;;  %v906_v11 = vld [vmem:[%s1190_s28 + $0x54] ss:$8 sps:$4 sm:$0xff]  }
  0x3c   : > { %486 = vmatprep.subr.bf16.mxu0 %v894_v3  ;;  %v908_v12 = vld [vmem:[%s1190_s28 + $0x50] ss:$8 sps:$4 sm:$0xff]   ;;  %v909_v13 = vld [vmem:[%s1190_s28 + $0x64] ss:$8 sps:$4 sm:$0xff]   ;;  %v911_v15 = vld [vmem:[%s1190_s28 + $0x60] ss:$8 sps:$4 sm:$0xff]  }
  0x3d   : > { %v941_v14 = vld [vmem:[%s1337_s1 + $0x4] ss:$8 sps:$4 sm:$0xff]   ;;  %v912_v16 = vld [vmem:[%s1190_s28 + $0x74] ss:$8 sps:$4 sm:$0xff]   ;;  %v914_v19 = vld [vmem:[%s1190_s28 + $0x70] ss:$8 sps:$4 sm:$0xff]  }
  0x3e   : > { %516 = vmatprep.mubr.bf16.mxu0 %v941_v14  ;;  %v280_v17 = vld [vmem:[%s1338_s2] sm:$0xff]  ;;  %v282_v18 = vld [vmem:[%s1338_s2 + $0x10] sm:$0xff]  ;;  %v281_v20 = vld [vmem:[%s1338_s2 + $0x8] sm:$0xff]  ;;  %vm603_vm8 = vcmask 261120   ;;  %s790_s26 = sshll.u32 %s1186_s23, 6  ;;  %s837_s14 = sshll.u32 %s1103_s22, 10 }
  0x3f   : > { %487 = vmatpush1.bf16.msra.mxu0 %v896_v4  ;;  %286 = vperm.xlu0 %889, %v280_v17   ;;  %v283_v21 = vld [vmem:[%s1338_s2 + $0x18] sm:$0xff]  ;;  %v915_v22 = vld [vmem:[%s1190_s28 + $0x84] ss:$8 sps:$4 sm:$0xff]   ;;  %v917_v25 = vld [vmem:[%s1190_s28 + $0x80] ss:$8 sps:$4 sm:$0xff]   ;;  %s1275_s29 = scalar_lea.vmem [#allocation5], %s790_s26  ;;  %s1289_s22 = scalar_lea.hbm %s1341_s5, %s837_s14 }
  0x40   : > { %488 = vmatprep.subr.bf16.mxu0 %v897_v5  ;;  %296 = vperm.xlu1 %890, %v282_v18   ;;  %v569_v23 = vld [vmem:[%s1340_s4] sm:$0xff]  ;;  %v570_v24 = vld [vmem:[%s1340_s4 + $0x8] sm:$0xff]  ;;  %v918_v26 = vld [vmem:[%s1190_s28 + $0x94] ss:$8 sps:$4 sm:$0xff]   ;;  %s709_s12 = sshll.u32 %s1275_s29, 4  ;;  %s696_s8 = scalar_lea.sflag [#allocation4], %s1186_s23  ;;  %s1283_s12 = int_to_ptr.vmem [resolvable:$true] %s709_s12 }
  0x41   : > { %v571_v27 = vld [vmem:[%s1340_s4 + $0x10] sm:$0xff]  ;;  %v572_v28 = vld [vmem:[%s1340_s4 + $0x18] sm:$0xff]  ;;  %v921_v30 = vld [vmem:[%s1190_s28 + $0xa4] ss:$8 sps:$4 sm:$0xff]   ;;  %s977_s7 = scalar_lea.vmem %s1283_s12, 1024  ;;  %p1348_p11 = scmp.ne.s32.totalorder %s1345_s30, 0 }
  0x42   : > { %v920_v29 = vld [vmem:[%s1190_s28 + $0x90] ss:$8 sps:$4 sm:$0xff]   ;;  %v923_v31 = vld [vmem:[%s1190_s28 + $0xa0] ss:$8 sps:$4 sm:$0xff]   ;;  %v924_v32 = vld [vmem:[%s1190_s28 + $0xb4] ss:$8 sps:$4 sm:$0xff]   ;;  %p978_p6 = scmp.ne.s32.totalorder %s1283_s12, %s977_s7 }
  0x43   : > { %489 = vmatpush1.bf16.msra.mxu0 %v899_v6  ;;  %291 = vperm.xlu0 %889, %v281_v20   ;;  %v926_v33 = vld [vmem:[%s1190_s28 + $0xb0] ss:$8 sps:$4 sm:$0xff]   ;;  %v927_v34 = vld [vmem:[%s1190_s28 + $0xc4] ss:$8 sps:$4 sm:$0xff]   ;;  %v929_v35 = vld [vmem:[%s1190_s28 + $0xc0] ss:$8 sps:$4 sm:$0xff]  }
  0x44   : > { %490 = vmatprep.subr.bf16.mxu0 %v900_v7  ;;  %301 = vperm.xlu1 %890, %v283_v21   ;;  %v930_v36 = vld [vmem:[%s1190_s28 + $0xd4] ss:$8 sps:$4 sm:$0xff]   ;;  %v932_v37 = vld [vmem:[%s1190_s28 + $0xd0] ss:$8 sps:$4 sm:$0xff]   ;;  %v933_v38 = vld [vmem:[%s1190_s28 + $0xe4] ss:$8 sps:$4 sm:$0xff]   ;;  %p979_p12 = pnand %p978_p6, %p1348_p11 }
  0x45   : > { %v935_v39 = vld [vmem:[%s1190_s28 + $0xe0] ss:$8 sps:$4 sm:$0xff]   ;;  %v936_v40 = vld [vmem:[%s1190_s28 + $0xf4] ss:$8 sps:$4 sm:$0xff]   ;;  %v938_v41 = vld [vmem:[%s1190_s28 + $0xf0] ss:$8 sps:$4 sm:$0xff]  }
  0x46   : > { %v939_v42 = vld [vmem:[%s1337_s1] ss:$8 sps:$4 sm:$0xff]   ;;  %v942_v43 = vld [vmem:[%s1337_s1 + $0x14] ss:$8 sps:$4 sm:$0xff]   ;;  %v944_v44 = vld [vmem:[%s1337_s1 + $0x10] ss:$8 sps:$4 sm:$0xff]   ;;  %p980_p13 = pneg %p979_p12 }
  0x47   : > { %491 = vmatpush1.bf16.msra.mxu0 %v902_v8  ;;  %575 = vperm.xlu0 %889, %v569_v23   ;;  %v946_v23 = vld [vmem:[%s1339_s3 + $0x8] sm:$0xff]   ;;  %s1049_s9 = smov [#allocation5]  }
  0x48   : > { %492 = vmatprep.subr.bf16.mxu0 %v903_v9  ;;  %580 = vperm.xlu1 %890, %v570_v24   ;;  %s981_s10 = sshll.u32 %s1049_s9, 4  ;;  %s982_s10 = int_to_ptr.vmem [resolvable:$false] %s981_s10 }
  0x49   : > { %s983_s11 = scalar_lea.vmem %s982_s10, 2048  ;;  %p984_p8 = scmp.lt.s32.totalorder %s1283_s12, %s982_s10 }
  0x4a   : > { %p985_p10 = scmp.lt.s32.totalorder %s983_s11, %s977_s7 }
  0x4b   : > { %493 = vmatpush1.bf16.msra.mxu0 %v905_v10  ;;  %585 = vperm.xlu0 %889, %v571_v27  }
  0x4c   : > { %494 = vmatprep.subr.bf16.mxu0 %v906_v11  ;;  %590 = vperm.xlu1 %890, %v572_v28   ;;  %p986_p0 = por %p985_p10, %p984_p8 }
  0x4e   : > { %p987_p2 = pnand %p986_p0, %p980_p13 }
  0x4f   : > { %495 = vmatpush1.bf16.msra.mxu0 %v908_v12 }
  0x50   : > { %496 = vmatprep.subr.bf16.mxu0 %v909_v13 }
  0x53   : > { %497 = vmatpush1.bf16.msra.mxu0 %v911_v15 }
  0x54   : > { %498 = vmatprep.subr.bf16.mxu0 %v912_v16 }
  0x57   : > { %499 = vmatpush1.bf16.msra.mxu0 %v914_v19 }
  0x58   : > { %500 = vmatprep.subr.bf16.mxu0 %v915_v22  ;;  %v945_v22 = vld [vmem:[%s1339_s3] sm:$0xff]  }
  0x5b   : > { %501 = vmatpush1.bf16.msra.mxu0 %v917_v25 }
  0x5c   : > { %502 = vmatprep.subr.bf16.mxu0 %v918_v26 }
  0x5f   : > { %503 = vmatpush1.bf16.msra.mxu0 %v920_v29 }
  0x60   : > { %504 = vmatprep.subr.bf16.mxu0 %v921_v30 }
  0x63   : > { %505 = vmatpush1.bf16.msra.mxu0 %v923_v31 }
  0x64   : > { %506 = vmatprep.subr.bf16.mxu0 %v924_v32 }
  0x67   : > { %507 = vmatpush1.bf16.msra.mxu0 %v926_v33 }
  0x68   : > { %508 = vmatprep.subr.bf16.mxu0 %v927_v34 }
  0x6b   : > { %509 = vmatpush1.bf16.msra.mxu0 %v929_v35 }
  0x6c   : > { %510 = vmatprep.subr.bf16.mxu0 %v930_v36 }
  0x6f   : > { %511 = vmatpush1.bf16.msra.mxu0 %v932_v37 }
  0x70   : > { %512 = vmatprep.subr.bf16.mxu0 %v933_v38 }
  0x73   : > { %513 = vmatpush1.bf16.msra.mxu0 %v935_v39 }
  0x74   : > { %514 = vmatprep.subr.bf16.mxu0 %v936_v40 }
  0x77   : > { %515 = vmatpush1.bf16.msra.mxu0 %v938_v41 }
  0x7a   : > { %517 = vmatmul.mubr.bf16.vlgmr.msra.gmra.mrb[0].mxu0 %v939_v42 }
  0x7b   : > { %526 = vmatprep.mubr.bf16.mxu0 %v942_v43 }
  0x82   : > { %527 = vmatmul.mubr.bf16.gmra.mrb[4].mxu0 %v944_v44 }
  0xbe   : > { %v287_v45 = vpop.permute.xlu0 %286 }
  0xbf   : > { %v297_v55 = vpop.permute.xlu1 %296 }
  0xc2   : > { %v292_v49 = vpop.permute.xlu0 %291 }
  0xc3   : > { %v302_v6 = vpop.permute.xlu1 %301 }
  0xc6   : > { %v576_v24 = vpop.permute.xlu0 %575 }
  0xc7   : > { %v581_v28 = vpop.permute.xlu1 %580 }
  0xca   : > { %v586_v40 = vpop.permute.xlu0 %585 }
 0x14d   : > { %v518_v46 = vpop.f32.mrb[0].mxu0 }
 0x14e   : > { %v519_v47 = vadd.f32 %v518_v46, %v287_v45  ;;  %v520_v48 = vpop.f32.mrb[1].mxu0 }
 0x14f   : > { %v521_v50 = vadd.f32 %v520_v48, %v287_v45  ;;  %v522_v51 = vpop.f32.mrb[2].mxu0  ;;  %v591_v45 = vpop.permute.xlu1 %590 }
 0x150   : > { %v545_v52 = vmul.f32 0.01, %v519_v47  ;;  %v523_v53 = vadd.f32 %v522_v51, %v292_v49  ;;  %v524_v54 = vpop.f32.mrb[3].mxu0  ;;  %vm537_vm0 = vcmp.gt.f32.partialorder %v519_v47, 0.0 }
 0x151   : > { %v546_v56 = vmul.f32 0.01, %v521_v50  ;;  %v525_v57 = vadd.f32 %v524_v54, %v292_v49  ;;  %vm538_vm1 = vcmp.gt.f32.partialorder %v521_v50, 0.0 }
 0x152   : > { %v547_v58 = vmul.f32 0.01, %v523_v53  ;;  %vm539_vm2 = vcmp.gt.f32.partialorder %v523_v53, 0.0  ;;  %v553_v60 = vsel %vm537_vm0, %v519_v47, %v545_v52 }
 0x153   : > { %v548_v59 = vmul.f32 0.01, %v525_v57  ;;  %vm540_vm3 = vcmp.gt.f32.partialorder %v525_v57, 0.0  ;;  %v554_v63 = vsel %vm538_vm1, %v521_v50, %v546_v56 }
 0x154   : > { %v555_v61 = vsel %vm539_vm2, %v523_v53, %v547_v58 }
 0x155   : > { %v528_v62 = vpop.f32.mrb[4].mxu0  ;;  %v556_v1 = vsel %vm540_vm3, %v525_v57, %v548_v59  ;;  %v565_v2 = vpack.c.bf16 %v555_v61, %v553_v60 }
 0x156   : > { %v529_v3 = vadd.f32 %v528_v62, %v297_v55  ;;  %v530_v4 = vpop.f32.mrb[5].mxu0  ;;  %v566_v5 = vpack.c.bf16 %v556_v1, %v554_v63 }
 0x157   : > { %v531_v7 = vadd.f32 %v530_v4, %v297_v55  ;;  %v532_v8 = vpop.f32.mrb[6].mxu0 }
 0x158   : > { %v549_v9 = vmul.f32 0.01, %v529_v3  ;;  %v533_v10 = vadd.f32 %v532_v8, %v302_v6  ;;  %v534_v11 = vpop.f32.mrb[7].mxu0  ;;  %610 = vmatprep.subr.bf16.mxu1 %v566_v5  ;;  %vm541_vm4 = vcmp.gt.f32.partialorder %v529_v3, 0.0 }
 0x159   : > { %v550_v12 = vmul.f32 0.01, %v531_v7  ;;  %v535_v13 = vadd.f32 %v534_v11, %v302_v6  ;;  %611 = vmatpush1.bf16.msra.mxu1 %v565_v2  ;;  %vm542_vm5 = vcmp.gt.f32.partialorder %v531_v7, 0.0 }
 0x15a   : > { %vm543_vm6 = vcmp.gt.f32.partialorder %v533_v10, 0.0  ;;  %v551_v14 = vmul.f32 0.01, %v533_v10  ;;  %v557_v16 = vsel %vm541_vm4, %v529_v3, %v549_v9 }
 0x15b   : > { %vm544_vm7 = vcmp.gt.f32.partialorder %v535_v13, 0.0  ;;  %v552_v15 = vmul.f32 0.01, %v535_v13  ;;  %v558_v18 = vsel %vm542_vm5, %v531_v7, %v550_v12 }
 0x15c   : > { %v559_v17 = vsel %vm543_vm6, %v533_v10, %v551_v14 }
 0x15d   : > { %v560_v19 = vsel %vm544_vm7, %v535_v13, %v552_v15  ;;  %v567_v20 = vpack.c.bf16 %v559_v17, %v557_v16 }
 0x15e   : > { %v568_v21 = vpack.c.bf16 %v560_v19, %v558_v18 }
 0x160   : > { %612 = vmatprep.subr.bf16.mxu1 %v568_v21 }
 0x161   : > { %613 = vmatpush1.bf16.msra.mxu1 %v567_v20 }
 0x164   : > { %829 = vmatmul.mubr.msk.bf16.vlgmr.msra.gmra.mrb[0].mxu1 %vm603_vm8, %v945_v22 }
 0x165   : > { %652 = vmatprep.mubr.bf16.mxu1 %v1048_v0 }
 0x16c   : > { %830 = vmatmul.mubr.msk.bf16.gmra.mrb[4].mxu1 %vm603_vm8, %v946_v23 }
 0x237   : > { %v644_v25 = vpop.f32.mrb[0].mxu1 }
 0x238   : > { %v645_v26 = vadd.f32 %v644_v25, %v576_v24  ;;  %v646_v27 = vpop.f32.mrb[1].mxu1 }
 0x239   : > { %v647_v29 = vadd.f32 %v646_v27, %v576_v24  ;;  %v648_v30 = vpop.f32.mrb[2].mxu1 }
 0x23a   : > { %vm663_vm9 = vcmp.gt.f32.partialorder %v645_v26, 0.0  ;;  %v671_v31 = vmul.f32 0.01, %v645_v26  ;;  %v649_v32 = vadd.f32 %v648_v30, %v581_v28  ;;  %v650_v33 = vpop.f32.mrb[3].mxu1 }
 0x23b   : > { %vm664_vm10 = vcmp.gt.f32.partialorder %v647_v29, 0.0  ;;  %v672_v34 = vmul.f32 0.01, %v647_v29  ;;  %v651_v0 = vadd.f32 %v650_v33, %v581_v28 }
 0x23c   : > { %v679_v35 = vsel %vm663_vm9, %v645_v26, %v671_v31  ;;  %vm665_vm11 = vcmp.gt.f32.partialorder %v649_v32, 0.0  ;;  %v673_v36 = vmul.f32 0.01, %v649_v32 }
 0x23d   : > { %687 = vst [vmem:[%s1275_s29] sm:$0xff] %v679_v35  ;;  %v680_v37 = vsel %vm664_vm10, %v647_v29, %v672_v34  ;;  %vm666_vm12 = vcmp.gt.f32.partialorder %v651_v0, 0.0  ;;  %v674_v38 = vmul.f32 0.01, %v651_v0 }
 0x23e   : > { %688 = vst [vmem:[%s1275_s29 + $0x8] sm:$0xff] %v680_v37  ;;  %v681_v39 = vsel %vm665_vm11, %v649_v32, %v673_v36 }
 0x23f   : > { %689 = vst [vmem:[%s1275_s29 + $0x10] sm:$0xff] %v681_v39  ;;  %v682_v41 = vsel %vm666_vm12, %v651_v0, %v674_v38  ;;  %v654_v42 = vpop.f32.mrb[4].mxu1 }
 0x240   : > { %690 = vst [vmem:[%s1275_s29 + $0x18] sm:$0xff] %v682_v41  ;;  %v655_v43 = vadd.f32 %v654_v42, %v586_v40  ;;  %v656_v44 = vpop.f32.mrb[5].mxu1 }
 0x241   : > { %v657_v46 = vadd.f32 %v656_v44, %v586_v40  ;;  %v658_v47 = vpop.f32.mrb[6].mxu1 }
 0x242   : > { %vm667_vm13 = vcmp.gt.f32.partialorder %v655_v43, 0.0  ;;  %v675_v48 = vmul.f32 0.01, %v655_v43  ;;  %v659_v49 = vadd.f32 %v658_v47, %v591_v45  ;;  %v660_v50 = vpop.f32.mrb[7].mxu1 }
 0x243   : > { %vm668_vm14 = vcmp.gt.f32.partialorder %v657_v46, 0.0  ;;  %v676_v51 = vmul.f32 0.01, %v657_v46  ;;  %v661_v52 = vadd.f32 %v660_v50, %v591_v45 }
 0x244   : > { %v683_v53 = vsel %vm667_vm13, %v655_v43, %v675_v48  ;;  %vm669_vm15 = vcmp.gt.f32.partialorder %v659_v49, 0.0  ;;  %v677_v54 = vmul.f32 0.01, %v659_v49 }
 0x245   : > { %691 = vst [vmem:[%s1275_s29 + $0x20] sm:$0xff] %v683_v53  ;;  %v684_v55 = vsel %vm668_vm14, %v657_v46, %v676_v51  ;;  %vm670_vm0 = vcmp.gt.f32.partialorder %v661_v52, 0.0  ;;  %v678_v56 = vmul.f32 0.01, %v661_v52 }
 0x246   : > { %692 = vst [vmem:[%s1275_s29 + $0x28] sm:$0xff] %v684_v55  ;;  %v685_v57 = vsel %vm669_vm15, %v659_v49, %v677_v54 }
 0x247   : > { %693 = vst [vmem:[%s1275_s29 + $0x30] sm:$0xff] %v685_v57  ;;  %v686_v58 = vsel %vm670_vm0, %v661_v52, %v678_v56 }
 0x248   : > { %694 = vst [vmem:[%s1275_s29 + $0x38] sm:$0xff] %v686_v58 }
 0x249   : > { %990 = shalt.err (!%p987_p2)
}
 0x24a   : > { %s991_s28 = scalar_lea.hbm %s1289_s22, 1024  ;;  %s995_s25 = scalar_lea.hbm %s1341_s5, 2048 }
 0x24b   : > { %p992_p4 = scmp.ne.s32.totalorder %s1289_s22, %s991_s28  ;;  %p996_p9 = scmp.lt.u32.totalorder %s1289_s22, %s1341_s5 }
 0x24c   : > { %p997_p1 = scmp.lt.u32.totalorder %s995_s25, %s991_s28  ;;  %p999_p6 = scmp.lt.u32.totalorder %s991_s28, %s1289_s22 }
 0x24d   : > { %p993_p5 = pnand %p992_p4, %p1348_p11 }
 0x24e   : > { %p998_p3 = por %p997_p1, %p996_p9 }
 0x24f   : > { %p994_p7 = pneg %p993_p5 }
 0x250   : > { %p1000_p12 = por %p999_p6, %p998_p3 }
 0x252   : > { %p1001_p13 = pnand %p1000_p12, %p994_p7 }
 0x254   : > { %1004 = shalt.err (!%p1001_p13)
}
 0x255   : > { %s1050_s14 = smov 256   ;;  %s1051_s15 = smov 16  }
 0x256   : > { %840 = dma.vmem_to_hbm [thread:$0]  (%p1348_p11), %s1283_s12, 1024, %s1289_s22, %s696_s8, %s1050_s14, %s1050_s14, %s1051_s15  }
 0x257 PF: > { %s724_s16 = sand.u32 1, %s1031_s18   ;;  %p1349_p8 = scmp.ne.s32.totalorder %s1346_s6, 0 }
 0x258   : > { %p1350_p10 = scmp.ge.s32.totalorder %s1043_s21, 2  ;;  %s725_s7 = scalar_lea.sflag [#allocation4], %s724_s16 }
 0x25a   : > { %p847_p0 = pnand %p1350_p10, %p1349_p8 }
 0x25c   : > { %1026 = dma.done.wait (!%p847_p0), %s725_s7, 1024  }
 0x25d   : > { %1028 = vsyncadd (!%p847_p0), %s725_s7, 4294966272  ;;  %p18_p2 = scmp.ge.s32.totalorder %s1107_s24, 4   ;;  %s1351_s18 = smov %s1035_s19 }
 0x25e   : > { %s1352_s19 = smov %s1039_s20  ;;  %s1353_s20 = smov %s1119_s27 }
 0x25f   : > { %s1354_s21 = smov %s1107_s24  ;;  %20 = sbr.rel (!%p18_p2) target bundleno = 5 (0x5), region = 85 }
 0x266   :  { %730 = vsyncpa [#allocation3], 1 }
 0x267   :  { %732 = vsyncpa [#allocation3 + $0x1], 1 }
 0x268   :  { %733 = vsyncpa [#allocation4], 1 }
 0x269   :  { %735 = vsyncpa [#allocation4 + $0x1], 1 }

</bundles_post_ra>
